<compile_context>
chip_gen: v6e
topology: v6e:2x2x1
jax: 0.10.0
libtpu: 0.0.40
codegen_flags: <defaults>
</compile_context>

<pallas_src>
import jax
import jax.numpy as jnp
from jax.experimental import pallas as pl
from jax.experimental.pallas import tpu as pltpu


IN_F = 9
HID_F = 32


def _round_up(x, m):
    return ((x + m - 1) // m) * m


def _mlp_kernel(x_ref, w1_ref, b1_ref, w2_ref, b2_ref, o_ref):
    # x_ref: (TILE_N, 9), w1_ref: (9, 32), b1_ref: (1, 32),
    # w2_ref: (32, 9),  b2_ref: (1, 9),  o_ref: (TILE_N, 9)
    x = x_ref[...]
    # fc1 + relu  (MXU matmul + VPU max, fused)
    h = jnp.dot(x, w1_ref[...], preferred_element_type=jnp.float32) + b1_ref[...]
    h = jnp.maximum(h, 0.0)
    # fc2
    y = jnp.dot(h, w2_ref[...], preferred_element_type=jnp.float32) + b2_ref[...]
    o_ref[...] = y.astype(o_ref.dtype)


def kernel_network_forward(x, w1, b1, w2, b2, *, tile_n=1024):
    """Pallas equivalent of KernelNetwork.forward.

    x : any shape whose total size is divisible by 9 (e.g. (B, 3, 3)).
    w1: (32, 9) torch-layout fc1.weight, b1: (32,)
    w2: (9, 32) torch-layout fc2.weight, b2: (9,)
    Returns: (N, 3, 3) with N = x.size // 9  (same as x.view(-1, 9) ... view(-1, 3, 3)).
    """
    x2d = x.reshape(-1, IN_F).astype(jnp.float32)
    n = x2d.shape[0]

    # Pick a tile: at most `tile_n` rows, at least the (8-row aligned) batch.
    tile = min(int(tile_n), _round_up(n, 8))
    tile = _round_up(tile, 8)
    n_pad = _round_up(n, tile)
    if n_pad != n:
        # Pad rows are computed (cheaply) and sliced off afterwards; this keeps
        # every grid block full-sized -> no OOB reads/writes on the last tile.
        x2d = jnp.pad(x2d, ((0, n_pad - n), (0, 0)))

    # Pre-transpose torch (out, in) weights to (in, out) for row-major matmul.
    w1_t = jnp.asarray(w1, jnp.float32).T            # (9, 32)
    w2_t = jnp.asarray(w2, jnp.float32).T            # (32, 9)
    b1_2d = jnp.asarray(b1, jnp.float32).reshape(1, HID_F)
    b2_2d = jnp.asarray(b2, jnp.float32).reshape(1, IN_F)

    num_blocks = n_pad // tile

    cost = pl.CostEstimate(
        flops=2 * (IN_F * HID_F + HID_F * IN_F) * n_pad,          # ~1152 * N
        transcendentals=0,
        bytes_accessed=(2 * n_pad * IN_F * 4                       # x in + y out
                        + (IN_F * HID_F + HID_F
                           + HID_F * IN_F + IN_F) * 4),            # weights/biases
    )

    out = pl.pallas_call(
        _mlp_kernel,
        out_shape=jax.ShapeDtypeStruct((n_pad, IN_F), jnp.float32),
        grid_spec=pl.GridSpec(
            grid=(num_blocks,),
            in_specs=[
                # Batch-tiled activations: block index follows the grid step.
                pl.BlockSpec((tile, IN_F), lambda i: (i, 0)),
                # Weights / biases: constant block index -> stay resident.
                pl.BlockSpec((IN_F, HID_F), lambda i: (0, 0)),
                pl.BlockSpec((1, HID_F), lambda i: (0, 0)),
                pl.BlockSpec((HID_F, IN_F), lambda i: (0, 0)),
                pl.BlockSpec((1, IN_F), lambda i: (0, 0)),
            ],
            out_specs=pl.BlockSpec((tile, IN_F), lambda i: (i, 0)),
        ),
        compiler_params=pltpu.CompilerParams(
            # Independent batch tiles: shard across v7x's two TensorCores.
            dimension_semantics=("parallel",)),
        cost_estimate=cost,
    )(x2d, w1_t, b1_2d, w2_t, b2_2d)

    if n_pad != n:
        out = out[:n]
    return out.reshape(-1, 3, 3)


def init_params(key):
    """Deterministic params matching the module's shapes.

    Weights ~ Normal(0, 0.3) (as in init_weights); biases use the default
    PyTorch Linear init U(-1/sqrt(fan_in), 1/sqrt(fan_in)).
    """
    k1, k2, k3, k4 = jax.random.split(key, 4)
    w1 = 0.3 * jax.random.normal(k1, (HID_F, IN_F), jnp.float32)   # fc1.weight
    b1 = jax.random.uniform(k2, (HID_F,), jnp.float32,
                            minval=-1.0 / jnp.sqrt(9.0),
                            maxval=1.0 / jnp.sqrt(9.0))            # fc1.bias
    w2 = 0.3 * jax.random.normal(k3, (IN_F, HID_F), jnp.float32)   # fc2.weight
    b2 = jax.random.uniform(k4, (IN_F,), jnp.float32,
                            minval=-1.0 / jnp.sqrt(32.0),
                            maxval=1.0 / jnp.sqrt(32.0))           # fc2.bias
    return w1, b1, w2, b2


def _reference(x, w1, b1, w2, b2):
    x2d = x.reshape(-1, IN_F)
    y = jnp.maximum(x2d @ w1.T + b1, 0.0) @ w2.T + b2
    return y.reshape(-1, 3, 3)


if __name__ == "__main__":
    key = jax.random.PRNGKey(0)
    kx, kx2, kp = jax.random.split(key, 3)
    w1, b1, w2, b2 = init_params(kp)

    # Case 1: small batch of 8 "3x3 kernels" (single grid block).
    x_small = jax.random.normal(kx, (8, 3, 3), jnp.float32)
    out_small = jax.block_until_ready(kernel_network_forward(x_small, w1, b1, w2, b2))
    ref_small = _reference(x_small, w1, b1, w2, b2)
    assert out_small.shape == (8, 3, 3)
    assert jnp.allclose(out_small, ref_small, atol=1e-5, rtol=1e-5)

    # Case 2: ragged batch (300 rows, tile_n=128) -> exercises the multi-block
    # pipelined path plus last-block padding.
    x_med = jax.random.normal(kx2, (300, 3, 3), jnp.float32)
    out_med = jax.block_until_ready(
        kernel_network_forward(x_med, w1, b1, w2, b2, tile_n=128))
    ref_med = _reference(x_med, w1, b1, w2, b2)
    assert out_med.shape == (300, 3, 3)
    assert jnp.allclose(out_med, ref_med, atol=1e-5, rtol=1e-5)

    print("KERNEL_OK")
</pallas_src>

<mosaic_0001>
module attributes {stable_mosaic.version = 11 : i64} {
  func.func @_mlp_kernel(%arg0: i32, %arg1: memref<8x9xf32, #tpu.memory_space<vmem>>, %arg2: memref<9x32xf32, #tpu.memory_space<vmem>>, %arg3: memref<1x32xf32, #tpu.memory_space<vmem>>, %arg4: memref<32x9xf32, #tpu.memory_space<vmem>>, %arg5: memref<1x9xf32, #tpu.memory_space<vmem>>, %arg6: memref<8x9xf32, #tpu.memory_space<vmem>>) attributes {dimension_semantics = [#tpu.dimension_semantics<parallel>], iteration_bounds = array<i64: 1>, scalar_prefetch = 0 : i64, scratch_operands = 0 : i64, tpu.core_type = #tpu.core_type<tc>, window_params = [{transform_indices = @transform_0, window_bounds = array<i64: 8, 9>}, {pipeline_mode = #tpu.pipeline_mode<synchronous>, transform_indices = @transform_1, window_bounds = array<i64: 9, 32>}, {pipeline_mode = #tpu.pipeline_mode<synchronous>, transform_indices = @transform_2, window_bounds = array<i64: 1, 32>}, {pipeline_mode = #tpu.pipeline_mode<synchronous>, transform_indices = @transform_3, window_bounds = array<i64: 32, 9>}, {pipeline_mode = #tpu.pipeline_mode<synchronous>, transform_indices = @transform_4, window_bounds = array<i64: 1, 9>}, {transform_indices = @transform_5, window_bounds = array<i64: 8, 9>}]} {
    %c0 = arith.constant 0 : index
    %c0_0 = arith.constant 0 : index
    %0 = vector.load %arg1[%c0, %c0_0] : memref<8x9xf32, #tpu.memory_space<vmem>>, vector<8x9xf32>
    %c0_1 = arith.constant 0 : index
    %c0_2 = arith.constant 0 : index
    %1 = vector.load %arg2[%c0_1, %c0_2] : memref<9x32xf32, #tpu.memory_space<vmem>>, vector<9x32xf32>
    %cst = arith.constant dense<0.000000e+00> : vector<8x32xf32>
    %2 = tpu.matmul %0, %1, %cst {dimension_numbers = #tpu.dot_dimension_numbers<[1], [0], [0], [1], [0, 0, 1, 1], [], []>} : vector<8x9xf32>, vector<9x32xf32>, vector<8x32xf32> -> vector<8x32xf32>
    %c0_3 = arith.constant 0 : index
    %c0_4 = arith.constant 0 : index
    %3 = vector.load %arg3[%c0_3, %c0_4] : memref<1x32xf32, #tpu.memory_space<vmem>>, vector<1x32xf32>
    %4 = vector.broadcast %3 : vector<1x32xf32> to vector<8x32xf32>
    %5 = arith.addf %2, %4 : vector<8x32xf32>
    %cst_5 = arith.constant 0.000000e+00 : f32
    %6 = vector.broadcast %cst_5 : f32 to vector<8x32xf32>
    %7 = arith.maximumf %5, %6 : vector<8x32xf32>
    %c0_6 = arith.constant 0 : index
    %c0_7 = arith.constant 0 : index
    %8 = vector.load %arg4[%c0_6, %c0_7] : memref<32x9xf32, #tpu.memory_space<vmem>>, vector<32x9xf32>
    %cst_8 = arith.constant dense<0.000000e+00> : vector<8x9xf32>
    %9 = tpu.matmul %7, %8, %cst_8 {dimension_numbers = #tpu.dot_dimension_numbers<[1], [0], [0], [1], [0, 0, 1, 1], [], []>} : vector<8x32xf32>, vector<32x9xf32>, vector<8x9xf32> -> vector<8x9xf32>
    %c0_9 = arith.constant 0 : index
    %c0_10 = arith.constant 0 : index
    %10 = vector.load %arg5[%c0_9, %c0_10] : memref<1x9xf32, #tpu.memory_space<vmem>>, vector<1x9xf32>
    %11 = vector.broadcast %10 : vector<1x9xf32> to vector<8x9xf32>
    %12 = arith.addf %9, %11 : vector<8x9xf32>
    %c0_11 = arith.constant 0 : index
    %c0_12 = arith.constant 0 : index
    %13 = vector.load %arg6[%c0_11, %c0_12] : memref<8x9xf32, #tpu.memory_space<vmem>>, vector<8x9xf32>
    tpu.vector_store %arg6[%c0_11, %c0_12], %12 {strides = array<i32>} : memref<8x9xf32, #tpu.memory_space<vmem>>, vector<8x9xf32>,
    return
  }
  func.func @transform_0(%arg0: i32) -> (i32, i32) {
    %c0_i32 = arith.constant 0 : i32
    %c0_i32_0 = arith.constant 0 : i32
    return %arg0, %c0_i32 : i32, i32
  }
  func.func @transform_1(%arg0: i32) -> (i32, i32) {
    %c0_i32 = arith.constant 0 : i32
    %c0_i32_0 = arith.constant 0 : i32
    %c0_i32_1 = arith.constant 0 : i32
    return %c0_i32, %c0_i32_0 : i32, i32
  }
  func.func @transform_2(%arg0: i32) -> (i32, i32) {
    %c0_i32 = arith.constant 0 : i32
    %c0_i32_0 = arith.constant 0 : i32
    %c0_i32_1 = arith.constant 0 : i32
    return %c0_i32, %c0_i32_0 : i32, i32
  }
  func.func @transform_3(%arg0: i32) -> (i32, i32) {
    %c0_i32 = arith.constant 0 : i32
    %c0_i32_0 = arith.constant 0 : i32
    %c0_i32_1 = arith.constant 0 : i32
    return %c0_i32, %c0_i32_0 : i32, i32
  }
  func.func @transform_4(%arg0: i32) -> (i32, i32) {
    %c0_i32 = arith.constant 0 : i32
    %c0_i32_0 = arith.constant 0 : i32
    %c0_i32_1 = arith.constant 0 : i32
    return %c0_i32, %c0_i32_0 : i32, i32
  }
  func.func @transform_5(%arg0: i32) -> (i32, i32) {
    %c0_i32 = arith.constant 0 : i32
    %c0_i32_0 = arith.constant 0 : i32
    return %arg0, %c0_i32 : i32, i32
  }
}

</mosaic_0001>

<bundles_post_ra>
// kernel: tpu_custom_call.1
= control target key start
LH: loop header
LB: loop body
LE: loop exit
PB: predicated region body
PF: predicated region fallthrough
CT: control target
= control target key end

     0   :  { %vm35_vm0 = vcmask 1040384   ;;  %v266_v1 = vmov 0.0   ;;  %vm267_vm1 = vmmov 0   ;;  %vm31_vm2 = vcmask 72704   ;;  %s331_s0 = inlined_call_operand.vmem [shape: f32[8,9], index: 0, kind: input, shape index: {}]   ;;  %s332_s1 = inlined_call_operand.vmem [shape: f32[9,32], index: 1, kind: input, shape index: {}]   ;;  %s333_s2 = inlined_call_operand.vmem [shape: f32[1,32], index: 2, kind: input, shape index: {}]   ;;  %s334_s3 = inlined_call_operand.vmem [shape: f32[32,9], index: 3, kind: input, shape index: {}]   ;;  %s335_s4 = inlined_call_operand.vmem [shape: f32[1,9], index: 4, kind: input, shape index: {}]   ;;  %s336_s5 = inlined_call_operand.hbm [shape: f32[8,9], index: 5, kind: output, shape index: {}]  }
   0x1   :  { %v23_v0 = vld [vmem:[%s332_s1 + $0x8] sm:$0x1]  ;;  %223 = vmatprep.subr.mxu0 %v266_v1  ;;  %v22_v2 = vld [vmem:[%s332_s1] sm:$0xff]  ;;  %227 = vmatprep.mubr.msk.f32.mxu0 %vm267_vm1, %v266_v1  ;;  %v113_v3 = vld [vmem:[%s334_s3 + $0x18] sm:$0xff] }
   0x2   :  { %224 = vmatpush3.msk.msra.mxu0 %vm35_vm0, %v23_v0  ;;  %v21_v4 = vld [vmem:[%s331_s0] sm:$0xff]  ;;  %230 = vmatprep.subr.mxu1 %v266_v1 }
   0x3   :  { %10 = vsyncpa [#allocation3], 0  ;;  %225 = vmatprep.subr.mxu0 %v266_v1  ;;  %231 = vmatpush3.msra.mxu1 %v113_v3  ;;  %v112_v5 = vld [vmem:[%s334_s3 + $0x10] sm:$0xff]  ;;  %v111_v6 = vld [vmem:[%s334_s3 + $0x8] sm:$0xff]  ;;  %vm121_vm3 = vcmask 261120   ;;  %s268_s9 = smov [#allocation2]  }
   0x4   :  { %226 = vmatpush3.msra.mxu0 %v22_v2  ;;  %232 = vmatprep.subr.mxu1 %v266_v1  ;;  %v110_v7 = vld [vmem:[%s334_s3] sm:$0xff]  ;;  %s202_s10 = sshll.u32 %s268_s9, 4  ;;  %s203_s10 = int_to_ptr.vmem [resolvable:$true] %s202_s10 }
   0x5   :  { %228 = vmatmul.mubr.msk.f32.vlgmr.msra.gmra.mxu0 %vm31_vm2, %v21_v4  ;;  %238 = vmatprep.mubr.msk.f32.mxu1 %vm267_vm1, %v266_v1  ;;  %v210_v8 = vld [vmem:[%s333_s2] ss:$0 sm:$0xff]  ;;  %s244_s3 = scalar_lea.vmem %s203_s10, 128  ;;  %p249_p1 = scmp.lt.s32.totalorder %s203_s10, %s203_s10 }
   0x6   :  { %233 = vmatpush3.msra.mxu1 %v112_v5  ;;  %v213_v13 = vld [vmem:[%s335_s4] ss:$0 sm:$0xff]  ;;  %p245_p0 = scmp.ne.s32.totalorder %s203_s10, %s244_s3  ;;  %p250_p2 = scmp.lt.s32.totalorder %s244_s3, %s244_s3 }
   0x7   :  { %234 = vmatprep.subr.mxu1 %v266_v1 }
   0x8   :  { %235 = vmatpush3.msra.mxu1 %v111_v6  ;;  %p251_p3 = por %p250_p2, %p249_p1 }
   0x9   :  { %236 = vmatprep.subr.mxu1 %v266_v1 }
   0xa   :  { %237 = vmatpush3.msra.mxu1 %v110_v7  ;;  %p252_p4 = pnand %p251_p3, %p245_p0 }
  0xc5   :  { %v105_v9 = vpop.f32.mrf.mxu0 }
  0xc6   :  { %v106_v10 = vadd.f32 %v210_v8, %v105_v9 }
  0xc7   :  { %v229_v11 = vpop.f32.mrf.mxu0 }
  0xc8   :  { %v109_v12 = vmax.f32 %v106_v10, 0.0 }
  0xca   :  { %239 = vmatmul.mubr.msk.f32.vlgmr.msra.gmra.mxu1 %vm121_vm3, %v109_v12 }
 0x18a   :  { %v191_v14 = vpop.f32.mrf.mxu1 }
 0x18b   :  { %v192_v15 = vadd.f32 %v213_v13, %v191_v14 }
 0x18c   :  { %v240_v16 = vpop.f32.mrf.mxu1 }
 0x18d   :  { %195 = vst.msk [vmem:[#allocation2] sm:$0xff] %vm31_vm2, %v192_v15 }
 0x18e   :  { %255 = shalt.err (!%p252_p4)
}
 0x18f   :  { %205 = dma.vmem_to_hbm [thread:$0]  %s203_s10, 128, %s336_s5, [#allocation3]  }
 0x190   :  { %264 = dma.done.wait [#allocation3], 128  }
 0x191   :  { %265 = vsyncadd [#allocation3], 4294967168 }
 0x192   :  { %209 = vsyncpa [#allocation3], 1 }

</bundles_post_ra>
